<compile_context>
chip_gen: v5e
topology: v5e:2x2
jax: 0.10.0
libtpu: 0.0.40
codegen_flags: <defaults>
</compile_context>

<pallas_src>
import jax
import jax.numpy as jnp
import numpy as np
from jax import lax
from jax.experimental import pallas as pl
from jax.experimental.pallas import tpu as pltpu

DIMS = 20       # embedding dim from the module
H1 = 20         # L1 output features
TB_MAX = 1024   # max batch-tile (lanes) per grid step


def _round_up(x, m):
    return ((x + m - 1) // m) * m


def _lm_kernel(idx_ref, gT_ref, b1_ref, w2_ref, b2_ref, out_ref):
    """Fused (embedding + L1) one-hot matmul + sigmoid MLP head, batch on lanes.

    idx_ref : (2, TB)    int32  token indices (row 0 / row 1 = first / second token)
    gT_ref  : (H1, 2*V)  f32    folded table [E @ W1a ; E @ W1b]^T
    b1_ref  : (H1, 1)    f32
    w2_ref  : (H1, 1)    f32
    b2_ref  : (1, 1)     f32
    out_ref : (1, TB)    f32    lane-dense output
    """
    V2 = gT_ref.shape[1]            # 2 * V
    V = V2 // 2
    TB = idx_ref.shape[1]

    idx = idx_ref[...]              # (2, TB)

    # One-hot gather fused with layer 1 on the MXU.  Rows [0, V) pick token 0,
    # rows [V, 2V) pick token 1, matching the row layout of gT.
    # TODO(synk): for a large vocabulary replace the one-hot matmul with a DMA
    # row-gather; for a small VMEM-resident table the MXU is idle so this is free.
    row_iota = lax.broadcasted_iota(jnp.int32, (V2, TB), 0)          # (2V, TB)
    target = jnp.where(row_iota < V, idx[0:1, :], idx[1:2, :] + V)   # (2V, TB)
    onehot = (row_iota == target).astype(jnp.float32)                # (2V, TB)

    # Layer 1: hT = gT @ onehot + b1  ==  (W1^T @ projT + b1)
    h = jnp.dot(gT_ref[...], onehot, preferred_element_type=jnp.float32)  # (H1, TB)
    a1 = jax.nn.sigmoid(h + b1_ref[...])

    # Layer 2 (20 -> 1): keep it off the MXU — weighted sublane reduce (XLU),
    # sigmoid on the EUP.
    z2 = jnp.sum(a1 * w2_ref[...], axis=0, keepdims=True) + b2_ref[...]   # (1, TB)
    out_ref[...] = jax.nn.sigmoid(z2)


def language_modeling_forward(x_idx, emb, w1, b1, w2, b2):
    """Forward pass matching the PyTorch module.

    x_idx: (B, 2) int32 token indices
    emb:   (V, DIMS) f32 embedding table
    w1:    (2*DIMS, H1) f32, b1: (H1,) f32     (so L1(p) = p @ w1 + b1)
    w2:    (H1, 1)      f32, b2: (1,)  f32
    returns: (B, 1) f32
    """
    B = int(x_idx.shape[0])
    V = int(emb.shape[0])

    # Batch lives on the lane axis -> pad to a multiple of 128 and tile.
    Bp128 = _round_up(max(B, 1), 128)
    if Bp128 <= TB_MAX:
        TB = Bp128
        Bp = Bp128
    else:
        TB = TB_MAX
        Bp = _round_up(B, TB)
    grid = (Bp // TB,)

    # One-time weight folding (linear-into-linear): fold E into W1.
    emb_f = emb.astype(jnp.float32)
    g0 = emb_f @ w1[:DIMS, :].astype(jnp.float32)        # (V, H1) first-token cols
    g1 = emb_f @ w1[DIMS:, :].astype(jnp.float32)        # (V, H1) second-token cols
    gT = jnp.concatenate([g0, g1], axis=0).T             # (H1, 2V)

    # One-time glue: transpose indices / params into the lane-major layout.
    idx_T = jnp.zeros((2, Bp), jnp.int32).at[:, :B].set(x_idx.T.astype(jnp.int32))
    b1c = b1.reshape(H1, 1).astype(jnp.float32)
    w2c = w2.reshape(H1, 1).astype(jnp.float32)
    b2c = b2.reshape(1, 1).astype(jnp.float32)

    def const_spec(shape):
        return pl.BlockSpec(shape, lambda i: (0, 0))

    # Advisory cost estimate (per-tile flops x grid steps, weights read once).
    flops_tile = 2 * H1 * (2 * V) * TB + 4 * H1 * TB
    cost = pl.CostEstimate(
        flops=grid[0] * flops_tile,
        transcendentals=grid[0] * (H1 + 1) * TB,
        bytes_accessed=(2 * Bp * 4) + (Bp * 4)
        + 4 * (H1 * 2 * V + H1 + H1 + 1),
    )

    out_padded = pl.pallas_call(
        _lm_kernel,
        out_shape=jax.ShapeDtypeStruct((1, Bp), jnp.float32),
        grid=grid,
        in_specs=[
            pl.BlockSpec((2, TB), lambda i: (0, i)),    # indices: tiled over batch
            const_spec((H1, 2 * V)),                    # folded emb+W1: resident
            const_spec((H1, 1)),                        # b1
            const_spec((H1, 1)),                        # w2
            const_spec((1, 1)),                         # b2
        ],
        out_specs=pl.BlockSpec((1, TB), lambda i: (0, i)),   # lane-dense output
        compiler_params=pltpu.CompilerParams(
            dimension_semantics=("parallel",),
            vmem_limit_bytes=32 * 1024 * 1024,
        ),
        cost_estimate=cost,
    )(idx_T, gT, b1c, w2c, b2c)

    return out_padded[0, :B].reshape(B, 1)


def _init_params(key, V):
    """Deterministic parameter init mirroring the module's __init__ shapes."""
    k_emb, k_w1, k_b1, k_w2, k_b2 = jax.random.split(key, 5)
    emb = jax.random.normal(k_emb, (V, DIMS), dtype=jnp.float32)
    # PyTorch nn.Linear init: U(-1/sqrt(fan_in), 1/sqrt(fan_in))
    lim1 = 1.0 / np.sqrt(2 * DIMS)
    w1 = jax.random.uniform(k_w1, (2 * DIMS, H1), minval=-lim1, maxval=lim1)
    b1 = jax.random.uniform(k_b1, (H1,), minval=-lim1, maxval=lim1)
    lim2 = 1.0 / np.sqrt(H1)
    w2 = jax.random.uniform(k_w2, (H1, 1), minval=-lim2, maxval=lim2)
    b2 = jax.random.uniform(k_b2, (1,), minval=-lim2, maxval=lim2)
    return emb, w1, b1, w2, b2


if __name__ == "__main__":
    key = jax.random.PRNGKey(0)
    V = 32   # vocab size
    B = 8    # batch of token pairs

    k_params, k_x = jax.random.split(key)
    emb, w1, b1, w2, b2 = _init_params(k_params, V)
    x_idx = jax.random.randint(k_x, (B, 2), 0, V, dtype=jnp.int32)

    out = language_modeling_forward(x_idx, emb, w1, b1, w2, b2)
    out = jax.block_until_ready(out)

    # Pure-JAX reference check (mirrors the PyTorch forward exactly)
    proj_ref = jnp.take(emb, x_idx, axis=0).reshape(-1, 2 * DIMS)
    a1_ref = jax.nn.sigmoid(proj_ref @ w1 + b1)
    ref = jax.nn.sigmoid(a1_ref @ w2 + b2)
    np.testing.assert_allclose(np.asarray(out), np.asarray(ref), rtol=1e-5, atol=1e-5)
    assert out.shape == (B, 1)

    print("KERNEL_OK")
</pallas_src>

<mosaic_0001>
module attributes {stable_mosaic.version = 11 : i64} {
  func.func @_lm_kernel(%arg0: i32, %arg1: memref<2x128xi32, #tpu.memory_space<vmem>>, %arg2: memref<20x64xf32, #tpu.memory_space<vmem>>, %arg3: memref<20x1xf32, #tpu.memory_space<vmem>>, %arg4: memref<20x1xf32, #tpu.memory_space<vmem>>, %arg5: memref<1x1xf32, #tpu.memory_space<vmem>>, %arg6: memref<1x128xf32, #tpu.memory_space<vmem>>) attributes {dimension_semantics = [#tpu.dimension_semantics<parallel>], iteration_bounds = array<i64: 1>, scalar_prefetch = 0 : i64, scratch_operands = 0 : i64, tpu.core_type = #tpu.core_type<tc>, window_params = [{transform_indices = @transform_0, window_bounds = array<i64: 2, 128>}, {pipeline_mode = #tpu.pipeline_mode<synchronous>, transform_indices = @transform_1, window_bounds = array<i64: 20, 64>}, {pipeline_mode = #tpu.pipeline_mode<synchronous>, transform_indices = @transform_2, window_bounds = array<i64: 20, 1>}, {pipeline_mode = #tpu.pipeline_mode<synchronous>, transform_indices = @transform_3, window_bounds = array<i64: 20, 1>}, {pipeline_mode = #tpu.pipeline_mode<synchronous>, transform_indices = @transform_4, window_bounds = array<i64: 1, 1>}, {transform_indices = @transform_5, window_bounds = array<i64: 1, 128>}]} {
    %c0 = arith.constant 0 : index
    %c0_0 = arith.constant 0 : index
    %0 = vector.load %arg1[%c0, %c0_0] : memref<2x128xi32, #tpu.memory_space<vmem>>, vector<2x128xi32>
    %1 = tpu.iota {dimensions = array<i32: 0>} : vector<64x128xi32>
    %c32_i32 = arith.constant 32 : i32
    %2 = vector.broadcast %c32_i32 : i32 to vector<64x128xi32>
    %3 = arith.cmpi slt, %1, %2 : vector<64x128xi32>
    %4 = vector.extract_strided_slice %0 {offsets = [0, 0], sizes = [1, 128], strides = [1, 1]} : vector<2x128xi32> to vector<1x128xi32>
    %5 = vector.extract_strided_slice %0 {offsets = [1, 0], sizes = [1, 128], strides = [1, 1]} : vector<2x128xi32> to vector<1x128xi32>
    %c32_i32_1 = arith.constant 32 : i32
    %6 = vector.broadcast %c32_i32_1 : i32 to vector<1x128xi32>
    %7 = arith.addi %5, %6 : vector<1x128xi32>
    %8 = vector.shape_cast %4 : vector<1x128xi32> to vector<1x128xi32>
    %9 = vector.broadcast %8 : vector<1x128xi32> to vector<64x128xi32>
    %10 = vector.shape_cast %7 : vector<1x128xi32> to vector<1x128xi32>
    %11 = vector.broadcast %10 : vector<1x128xi32> to vector<64x128xi32>
    %12 = arith.select %3, %9, %11 : vector<64x128xi1>, vector<64x128xi32>
    %13 = arith.cmpi eq, %1, %12 : vector<64x128xi32>
    %14 = arith.extui %13 : vector<64x128xi1> to vector<64x128xi32>
    %15 = arith.sitofp %14 : vector<64x128xi32> to vector<64x128xf32>
    %c0_2 = arith.constant 0 : index
    %c0_3 = arith.constant 0 : index
    %16 = vector.load %arg2[%c0_2, %c0_3] : memref<20x64xf32, #tpu.memory_space<vmem>>, vector<20x64xf32>
    %cst = arith.constant dense<0.000000e+00> : vector<20x128xf32>
    %17 = tpu.matmul %16, %15, %cst {dimension_numbers = #tpu.dot_dimension_numbers<[1], [0], [0], [1], [0, 0, 1, 1], [], []>} : vector<20x64xf32>, vector<64x128xf32>, vector<20x128xf32> -> vector<20x128xf32>
    %c0_4 = arith.constant 0 : index
    %c0_5 = arith.constant 0 : index
    %18 = vector.load %arg3[%c0_4, %c0_5] : memref<20x1xf32, #tpu.memory_space<vmem>>, vector<20x1xf32>
    %19 = vector.broadcast %18 : vector<20x1xf32> to vector<20x128xf32>
    %20 = arith.addf %17, %19 : vector<20x128xf32>
    %21 = arith.negf %20 : vector<20x128xf32>
    %22 = math.exp %21 : vector<20x128xf32>
    %cst_6 = arith.constant 1.000000e+00 : f32
    %23 = vector.broadcast %cst_6 : f32 to vector<20x128xf32>
    %24 = arith.addf %23, %22 : vector<20x128xf32>
    %25 = arith.divf %23, %24 : vector<20x128xf32>
    %c0_7 = arith.constant 0 : index
    %c0_8 = arith.constant 0 : index
    %26 = vector.load %arg4[%c0_7, %c0_8] : memref<20x1xf32, #tpu.memory_space<vmem>>, vector<20x1xf32>
    %27 = vector.broadcast %26 : vector<20x1xf32> to vector<20x128xf32>
    %28 = arith.mulf %25, %27 : vector<20x128xf32>
    %cst_9 = arith.constant dense<0.000000e+00> : vector<128xf32>
    %29 = vector.multi_reduction <add>, %28, %cst_9 [0] : vector<20x128xf32> to vector<128xf32>
    %30 = vector.shape_cast %29 : vector<128xf32> to vector<1x128xf32>
    %c0_10 = arith.constant 0 : index
    %c0_11 = arith.constant 0 : index
    %31 = vector.load %arg5[%c0_10, %c0_11] : memref<1x1xf32, #tpu.memory_space<vmem>>, vector<1x1xf32>
    %32 = vector.broadcast %31 : vector<1x1xf32> to vector<1x128xf32>
    %33 = arith.addf %30, %32 : vector<1x128xf32>
    %34 = arith.negf %33 : vector<1x128xf32>
    %35 = math.exp %34 : vector<1x128xf32>
    %cst_12 = arith.constant 1.000000e+00 : f32
    %36 = vector.broadcast %cst_12 : f32 to vector<1x128xf32>
    %37 = arith.addf %36, %35 : vector<1x128xf32>
    %38 = arith.divf %36, %37 : vector<1x128xf32>
    %c0_13 = arith.constant 0 : index
    %c0_14 = arith.constant 0 : index
    %39 = vector.load %arg6[%c0_13, %c0_14] : memref<1x128xf32, #tpu.memory_space<vmem>>, vector<1x128xf32>
    tpu.vector_store %arg6[%c0_13, %c0_14], %38 {strides = array<i32>} : memref<1x128xf32, #tpu.memory_space<vmem>>, vector<1x128xf32>,
    return
  }
  func.func @transform_0(%arg0: i32) -> (i32, i32) {
    %c0_i32 = arith.constant 0 : i32
    %c0_i32_0 = arith.constant 0 : i32
    return %c0_i32, %arg0 : i32, i32
  }
  func.func @transform_1(%arg0: i32) -> (i32, i32) {
    %c0_i32 = arith.constant 0 : i32
    %c0_i32_0 = arith.constant 0 : i32
    %c0_i32_1 = arith.constant 0 : i32
    return %c0_i32, %c0_i32_0 : i32, i32
  }
  func.func @transform_2(%arg0: i32) -> (i32, i32) {
    %c0_i32 = arith.constant 0 : i32
    %c0_i32_0 = arith.constant 0 : i32
    %c0_i32_1 = arith.constant 0 : i32
    return %c0_i32, %c0_i32_0 : i32, i32
  }
  func.func @transform_3(%arg0: i32) -> (i32, i32) {
    %c0_i32 = arith.constant 0 : i32
    %c0_i32_0 = arith.constant 0 : i32
    %c0_i32_1 = arith.constant 0 : i32
    return %c0_i32, %c0_i32_0 : i32, i32
  }
  func.func @transform_4(%arg0: i32) -> (i32, i32) {
    %c0_i32 = arith.constant 0 : i32
    %c0_i32_0 = arith.constant 0 : i32
    %c0_i32_1 = arith.constant 0 : i32
    return %c0_i32, %c0_i32_0 : i32, i32
  }
  func.func @transform_5(%arg0: i32) -> (i32, i32) {
    %c0_i32 = arith.constant 0 : i32
    %c0_i32_0 = arith.constant 0 : i32
    return %c0_i32, %arg0 : i32, i32
  }
}

</mosaic_0001>

<bundles_post_ra>
// kernel: tpu_custom_call.1
= control target key start
LH: loop header
LB: loop body
LE: loop exit
PB: predicated region body
PF: predicated region fallthrough
CT: control target
= control target key end

     0   :  { %s421_s0 = inlined_call_operand.vmem [shape: s32[2,128], index: 0, kind: input, shape index: {}]   ;;  %s422_s1 = inlined_call_operand.vmem [shape: f32[20,64], index: 1, kind: input, shape index: {}]   ;;  %s423_s2 = inlined_call_operand.vmem [shape: f32[20,1], index: 2, kind: input, shape index: {}]   ;;  %s424_s3 = inlined_call_operand.vmem [shape: f32[20,1], index: 3, kind: input, shape index: {}]   ;;  %s425_s4 = inlined_call_operand.<no memory space> [shape: f32[1,1], index: 4, kind: input, shape index: {}]   ;;  %s426_s5 = inlined_call_operand.hbm [shape: f32[1,128], index: 5, kind: output, shape index: {}]  }
   0x1   :  { %v10_v0 = vstv %s425_s4 }
   0x2   :  { %11 = vst [vmem:[#allocation2] sm:$0x1] %v10_v0 }
   0x3   :  { %v23_v1 = vld [vmem:[%s421_s0] sm:$0x3]  ;;  %v24_v2 = vlaneseq  ;;  %v352_v5 = vmov 0   ;;  %v191_v7 = vld [vmem:[%s424_s3 + $0x8] sm:$0xff]  ;;  %v81_v9 = vld [vmem:[%s423_s2 + $0x10] sm:$0xf] }
   0x4   :  { %v79_v3 = vld [vmem:[%s423_s2] sm:$0xff]  ;;  %v41_v4 = vadd.s32 32, %v23_v1  ;;  %307 = vset.pattern.permute.xlu0 %v352_v5  ;;  %308 = vset.pattern.permute.xlu1 %v352_v5 }
   0x5   :  { %v25_v6 = vshrl.u32 %v24_v2, 7  ;;  %84 = vperm.xlu0 %307, %v79_v3   ;;  %309 = vset.pattern.permute.xlu2 %v352_v5 }
   0x6   :  { %v43_v8 = vperm.slane %v41_v4, 1  ;;  %200 = vperm.xlu2 %309, %v191_v7   ;;  %94 = vperm.xlu1 %308, %v81_v9  }
   0x7   :  { %v32_v10 = vadd.s32 56, %v25_v6  ;;  %v31_v11 = vadd.s32 48, %v25_v6  ;;  %v30_v12 = vadd.s32 40, %v25_v6 }
   0x8   :  { %12 = vsyncpa [#allocation4], 0  ;;  %v29_v13 = vadd.s32 32, %v25_v6  ;;  %v353_v14 = vmov 1.0   ;;  %v80_v15 = vld [vmem:[%s423_s2 + $0x8] sm:$0xff]  ;;  %v28_v16 = vadd.s32 24, %v25_v6 }
   0x9   :  { %vm59_vm0 = vcmp.eq.s32.totalorder %v32_v10, %v43_v8  ;;  %vm58_vm1 = vcmp.eq.s32.totalorder %v31_v11, %v43_v8  ;;  %vm57_vm2 = vcmp.eq.s32.totalorder %v30_v12, %v43_v8  ;;  %v42_v17 = vperm.slane %v23_v1, 0  ;;  %v190_v18 = vld [vmem:[%s424_s3] sm:$0xff]  ;;  %v192_v20 = vld [vmem:[%s424_s3 + $0x10] sm:$0xf]  ;;  %v77_v24 = vld [vmem:[%s422_s1 + $0x8] sm:$0xff]  ;;  %s256_s14 = sshll.u32 %s426_s5, 4  ;;  %s257_s14 = int_to_ptr.hbm [resolvable:$true] %s256_s14 }
   0xa   :  { %273 = vmatpush.msk.msra.mxu0 %vm59_vm0, %v353_v14  ;;  %288 = vmatpush.msk.msra.mxu1 %vm59_vm0, %v353_v14  ;;  %vm56_vm3 = vcmp.eq.s32.totalorder %v29_v13, %v43_v8  ;;  %v27_v19 = vadd.s32 16, %v25_v6  ;;  %v26_v21 = vadd.s32 8, %v25_v6  ;;  %v221_v22 = vld [vmem:[#allocation2] sm:$0x1]  ;;  %vm97_vm8 = vcmask 523264  }
   0xb   :  { %289 = vmatpush.msk.msra.mxu2 %vm59_vm0, %v353_v14  ;;  %vm55_vm4 = vcmp.eq.s32.totalorder %v28_v16, %v42_v17  ;;  %vm52_vm7 = vcmp.eq.s32.totalorder %v25_v6, %v42_v17  ;;  %v76_v23 = vld [vmem:[%s422_s1] sm:$0xff]  ;;  %v78_v25 = vld [vmem:[%s422_s1 + $0x10] sm:$0xf]  ;;  %s354_s1 = smov [#allocation3]  }
   0xc   :  { %274 = vmatpush.msk.msra.mxu0 %vm58_vm1, %v353_v14  ;;  %290 = vmatpush.msk.msra.mxu1 %vm58_vm1, %v353_v14  ;;  %vm54_vm5 = vcmp.eq.s32.totalorder %v27_v19, %v42_v17  ;;  %vm53_vm6 = vcmp.eq.s32.totalorder %v26_v21, %v42_v17  ;;  %s254_s11 = sshll.u32 %s354_s1, 4  ;;  %s255_s11 = int_to_ptr.vmem [resolvable:$true] %s254_s11 }
   0xd   :  { %291 = vmatpush.msk.msra.mxu2 %vm58_vm1, %v353_v14  ;;  %89 = vperm.xlu0 %307, %v80_v15  }
   0xe   :  { %275 = vmatpush.msk.msra.mxu0 %vm57_vm2, %v353_v14  ;;  %292 = vmatpush.msk.msra.mxu1 %vm57_vm2, %v353_v14 }
   0xf   :  { %293 = vmatpush.msk.msra.mxu2 %vm57_vm2, %v353_v14  ;;  %195 = vperm.xlu1 %308, %v190_v18  }
  0x10   :  { %276 = vmatpush.msk.msra.mxu0 %vm56_vm3, %v353_v14  ;;  %294 = vmatpush.msk.msra.mxu1 %vm56_vm3, %v353_v14 }
  0x11   :  { %295 = vmatpush.msk.msra.mxu2 %vm56_vm3, %v353_v14  ;;  %205 = vperm.xlu2 %309, %v192_v20  }
  0x12   :  { %277 = vmatpush.msk.msra.mxu0 %vm55_vm4, %v353_v14  ;;  %296 = vmatpush.msk.msra.mxu1 %vm55_vm4, %v353_v14 }
  0x13   :  { %297 = vmatpush.msk.msra.mxu2 %vm55_vm4, %v353_v14 }
  0x14   :  { %278 = vmatpush.msk.msra.mxu0 %vm54_vm5, %v353_v14  ;;  %298 = vmatpush.msk.msra.mxu1 %vm54_vm5, %v353_v14 }
  0x15   :  { %299 = vmatpush.msk.msra.mxu2 %vm54_vm5, %v353_v14  ;;  %224 = vperm.xlu0 %307, %v221_v22   ;;  %vm212_vm5 = vcmask 1043456  }
  0x16   :  { %279 = vmatpush.msk.msra.mxu0 %vm53_vm6, %v353_v14  ;;  %300 = vmatpush.msk.msra.mxu1 %vm53_vm6, %v353_v14 }
  0x17   :  { %301 = vmatpush.msk.msra.mxu2 %vm53_vm6, %v353_v14 }
  0x18   :  { %280 = vmatpush.msk.msra.mxu0 %vm52_vm7, %v353_v14  ;;  %302 = vmatpush.msk.msra.mxu1 %vm52_vm7, %v353_v14 }
  0x19   :  { %303 = vmatpush.msk.msra.mxu2 %vm52_vm7, %v353_v14  ;;  %281 = vmatmul.msk.f32.vlgmr.msra.gmra.mxu0 %vm97_vm8, %v76_v23 }
  0x1a   :  { %282 = vmatmul.msk.f32.vlgmr.msra.gmra.mxu1 %vm97_vm8, %v77_v24  ;;  %283 = vmatmul.msk.f32.vlgmr.msra.gmra.mxu2 %vm97_vm8, %v78_v25 }
  0x60   :  { %v201_v57 = vpop.permute.xlu2 %200 }
  0x6b   :  { %v206_v13 = vpop.permute.xlu2 %205 }
  0x77   :  { %v85_v26 = vpop.permute.xlu0 %84 }
  0x78   :  { %v95_v34 = vpop.permute.xlu1 %94 }
  0x7f   :  { %v90_v28 = vpop.permute.xlu0 %89 }
  0x81   :  { %v196_v7 = vpop.permute.xlu1 %195 }
  0x87   :  { %v225_v23 = vpop.permute.xlu0 %224 }
  0x88   :  { %v227_v25 = vperm.slane %v225_v23, 0 }
  0x96   :  { %v124_v27 = vpop.f32.mrf.mxu0 }
  0x97   :  { %v125_v29 = vadd.f32 %v124_v27, %v85_v26  ;;  %v127_v30 = vpop.f32.mrf.mxu1 }
  0x98   :  { %v128_v31 = vadd.f32 %v127_v30, %v90_v28 }
  0x99   :  { %v284_v32 = vmul.f32 -1.442695, %v125_v29 }
  0x9a   :  { %v285_v33 = vmul.f32 -1.442695, %v128_v31 }
  0x9b   :  { %310 = vpow2.f32 %v284_v32 }
  0x9c   :  { %312 = vpow2.f32 %v285_v33 }
  0x9d   :  { %v130_v35 = vpop.f32.mrf.mxu2 }
  0x9e   :  { %v131_v36 = vadd.f32 %v130_v35, %v95_v34 }
  0xa0   :  { %v286_v37 = vmul.f32 -1.442695, %v131_v36 }
  0xa1   :  { %v311_v38 = vpop.eup %310 }
  0xa2   :  { %v313_v39 = vpop.eup %312  ;;  %v142_v40 = vadd.f32 1.0, %v311_v38  ;;  %314 = vpow2.f32 %v286_v37 }
  0xa3   :  { %v143_v41 = vadd.f32 1.0, %v313_v39 }
  0xa4   :  { %316 = vrcp.f32 %v142_v40  ;;  %v156_v51 = vand.u32 2147483648, %v142_v40  ;;  %vm150_vm11 = vweird.f32 %v142_v40  ;;  %v154_v56 = vand.u32 2147483647, %v142_v40 }
  0xa5   :  { %318 = vrcp.f32 %v143_v41  ;;  %v171_v53 = vand.u32 2147483648, %v143_v41  ;;  %v169_v58 = vand.u32 2147483647, %v143_v41  ;;  %vm165_vm13 = vweird.f32 %v143_v41 }
  0xa6   :  { %v157_v62 = vor.u32 1.1754944e-38, %v156_v51  ;;  %vm155_vm15 = vcmp.eq.f32.partialorder %v154_v56, 8.507059e+37 }
  0xa7   :  { %v172_v0 = vor.u32 1.1754944e-38, %v171_v53  ;;  %vm170_vm0 = vcmp.eq.f32.partialorder %v169_v58, 8.507059e+37 }
  0xa8   :  { %v315_v42 = vpop.eup %314 }
  0xa9   :  { %v144_v43 = vadd.f32 1.0, %v315_v42 }
  0xaa   :  { %v317_v44 = vpop.eup %316 }
  0xab   :  { %v319_v45 = vpop.eup %318  ;;  %v146_v46 = vmul.f32 %v317_v44, %v142_v40  ;;  %320 = vrcp.f32 %v144_v43  ;;  %vm151_vm9 = vweird.f32 %v317_v44  ;;  %v184_v2 = vand.u32 2147483647, %v144_v43 }
  0xac   :  { %v161_v47 = vmul.f32 %v319_v45, %v143_v41  ;;  %vm166_vm10 = vweird.f32 %v319_v45  ;;  %vm152_vm12 = vmor %vm150_vm11, %vm151_vm9  ;;  %v186_v3 = vand.u32 2147483648, %v144_v43  ;;  %vm180_vm2 = vweird.f32 %v144_v43 }
  0xad   :  { %v147_v48 = vsub.f32 1.0, %v146_v46  ;;  %vm167_vm14 = vmor %vm165_vm13, %vm166_vm10  ;;  %vm185_vm4 = vcmp.eq.f32.partialorder %v184_v2, 8.507059e+37 }
  0xae   :  { %v162_v49 = vsub.f32 1.0, %v161_v47  ;;  %v187_v11 = vor.u32 1.1754944e-38, %v186_v3 }
  0xaf   :  { %v148_v50 = vmul.f32 %v317_v44, %v147_v48 }
  0xb0   :  { %v163_v52 = vmul.f32 %v319_v45, %v162_v49 }
  0xb1   :  { %v321_v54 = vpop.eup %320  ;;  %v149_v55 = vadd.f32 %v317_v44, %v148_v50 }
  0xb2   :  { %v164_v59 = vadd.f32 %v319_v45, %v163_v52  ;;  %v176_v60 = vmul.f32 %v321_v54, %v144_v43  ;;  %vm181_vm1 = vweird.f32 %v321_v54 }
  0xb3   :  { %v153_v61 = vsel %vm152_vm12, %v317_v44, %v149_v55  ;;  %vm182_vm3 = vmor %vm180_vm2, %vm181_vm1 }
  0xb4   :  { %v168_v63 = vsel %vm167_vm14, %v319_v45, %v164_v59  ;;  %v177_v1 = vsub.f32 1.0, %v176_v60  ;;  %v158_v4 = vsel %vm155_vm15, %v157_v62, %v153_v61 }
  0xb5   :  { %v173_v5 = vsel %vm170_vm0, %v172_v0, %v168_v63  ;;  %v208_v9 = vmul.f32 %v196_v7, %v158_v4 }
  0xb6   :  { %v178_v6 = vmul.f32 %v321_v54, %v177_v1  ;;  %v209_v10 = vmul.f32 %v201_v57, %v173_v5 }
  0xb8   :  { %v179_v8 = vadd.f32 %v321_v54, %v178_v6  ;;  %v211_v16 = vadd.f32 %v209_v10, %v208_v9 }
  0xba   :  { %v183_v12 = vsel %vm182_vm3, %v321_v54, %v179_v8 }
  0xbb   :  { %v188_v14 = vsel %vm185_vm4, %v187_v11, %v183_v12 }
  0xbc   :  { %v210_v15 = vmul.f32 %v206_v13, %v188_v14 }
  0xbe   :  { %v213_v17 = vsel %vm212_vm5, %v210_v15, 0.0 }
  0xbf   :  { %v214_v18 = vadd.f32 %v213_v17, %v211_v16 }
  0xc1   :  { %v215_v19 = vrot.slane %v214_v18, 4 }
  0xc3   :  { %v216_v20 = vadd.f32 %v215_v19, %v214_v18 }
  0xc5   :  { %v217_v21 = vrot.slane %v216_v20, 2 }
  0xc7   :  { %v218_v22 = vadd.f32 %v217_v21, %v216_v20 }
  0xc9   :  { %v219_v24 = vrot.slane %v218_v22, 1 }
  0xcb   :  { %v220_v26 = vadd.f32 %v219_v24, %v218_v22 }
  0xcd   :  { %v228_v27 = vadd.f32 %v227_v25, %v220_v26 }
  0xcf   :  { %v287_v28 = vmul.f32 -1.442695, %v228_v27 }
  0xd1   :  { %322 = vpow2.f32 %v287_v28 }
  0xd7   :  { %v323_v29 = vpop.eup %322 }
  0xd8   :  { %v232_v30 = vadd.f32 1.0, %v323_v29 }
  0xda   :  { %324 = vrcp.f32 %v232_v30  ;;  %v244_v34 = vand.u32 2147483648, %v232_v30  ;;  %v242_v36 = vand.u32 2147483647, %v232_v30  ;;  %vm238_vm7 = vweird.f32 %v232_v30 }
  0xdc   :  { %v245_v38 = vor.u32 1.1754944e-38, %v244_v34  ;;  %vm243_vm9 = vcmp.eq.f32.partialorder %v242_v36, 8.507059e+37 }
  0xe0   :  { %v325_v31 = vpop.eup %324 }
  0xe1   :  { %v234_v32 = vmul.f32 %v325_v31, %v232_v30  ;;  %vm239_vm6 = vweird.f32 %v325_v31 }
  0xe2   :  { %vm240_vm8 = vmor %vm238_vm7, %vm239_vm6 }
  0xe3   :  { %v235_v33 = vsub.f32 1.0, %v234_v32 }
  0xe5   :  { %v236_v35 = vmul.f32 %v325_v31, %v235_v33 }
  0xe7   :  { %v237_v37 = vadd.f32 %v325_v31, %v236_v35 }
  0xe9   :  { %v241_v39 = vsel %vm240_vm8, %v325_v31, %v237_v37 }
  0xea   :  { %v246_v40 = vsel %vm243_vm9, %v245_v38, %v241_v39 }
  0xeb   :  { %248 = vst [vmem:[#allocation3] sm:$0x1] %v246_v40 }
  0xec   :  { %259 = dma.vmem_to_hbm [thread:$0]  %s255_s11, 16, %s257_s14, [#allocation4]  }
  0xed   :  { %350 = dma.done.wait [#allocation4], 16  }
  0xee   :  { %351 = vsyncadd [#allocation4], 4294967280 }
  0xef   :  { %264 = vsyncpa [#allocation4], 1 }

</bundles_post_ra>
